<compile_context>
chip_gen: v7x
topology: tpu7x:2x2x1
jax: 0.10.0
libtpu: 0.0.40
codegen_flags: <defaults>
</compile_context>

<pallas_src>
import functools

import jax
import jax.numpy as jnp
from jax import lax
from jax.experimental import pallas as pl
from jax.experimental.pallas import tpu as pltpu


_N_BISECT = 26   # threshold error <= (row value range) / 2**26  ->  ~1e-8 relative


def _entropy_stats_kernel(w_ref, x_ref, stats_ref, *, k):
    # w_ref:     (1,) f32 in SMEM  — the 1x1 conv weight (a scalar; 1->1 ch, no bias)
    # x_ref:     [TM, HW] input tile; one row = one (batch, channel) image
    # stats_ref: [TM, 128] f32 lane-dense stats; lane 0 = sum(entropy) over the row,
    #            lanes 1..127 = sum of the k largest entropy values of the row.
    tm, _ = x_ref.shape
    w = w_ref[0]

    f1 = x_ref[...].astype(jnp.float32) * w           # 1x1 conv (VPU)
    ent = -f1 * jnp.log(f1)                            # -p*log(p)   (EUP log)

    row_sum = jnp.sum(ent, axis=-1, keepdims=True)     # [TM, 1]   (XLU lane reduce)

    # --- per-row sum of the k largest values via threshold bisection ----------
    # Invariant: count(ent >= lo) >= k.  After _N_BISECT halvings lo ~= the k-th
    # largest value; the (k - count) * lo correction makes the top-k sum exact up
    # to (row range) / 2**_N_BISECT, ties included.  All passes stay in VMEM.
    lo0 = jnp.min(ent, axis=-1, keepdims=True)         # [TM, 1]
    hi0 = jnp.max(ent, axis=-1, keepdims=True)         # [TM, 1]
    kf = jnp.float32(k)

    def body(_, carry):
        lo, hi = carry
        mid = 0.5 * (lo + hi)
        cnt = jnp.sum(jnp.where(ent >= mid, 1.0, 0.0), axis=-1, keepdims=True)
        take = cnt >= kf
        return jnp.where(take, mid, lo), jnp.where(take, hi, mid)

    lo, _ = lax.fori_loop(0, _N_BISECT, body, (lo0, hi0))

    gt = ent > lo
    m = jnp.sum(jnp.where(gt, 1.0, 0.0), axis=-1, keepdims=True)
    sum_gt = jnp.sum(jnp.where(gt, ent, 0.0), axis=-1, keepdims=True)
    top_sum = sum_gt + (kf - m) * lo                    # [TM, 1] sum of top-k values

    lane = lax.broadcasted_iota(jnp.int32, (tm, 128), dimension=1)
    stats_ref[...] = jnp.where(lane == 0, row_sum, top_sum)   # lane-dense store


def _pick_row_tile(rows: int, hw: int, dsize: int) -> int:
    # Per tile-row working set: 2 double-buffered input rows + ~2 live f32 copies
    # of the entropy row inside the kernel + the (double-buffered) stats lanes.
    per_row = 2 * hw * dsize + 2 * hw * 4 + 2 * 128 * 4
    budget = 24 * 1024 * 1024          # headroom inside v7x's 64 MiB VMEM (32 MiB scoped)
    tm = min(budget // per_row, 1024)  # >1024 rows stops paying (per-step overhead amortized)
    tm = max(8, (tm // 8) * 8)         # sublane-aligned
    rows8 = pl.cdiv(rows, 8) * 8
    return int(min(tm, rows8))


def fore_back_dis_forward(hsi, w):
    """Returns (idx, delta): indices of the top-3 channels and the per-channel deltas."""
    B, C, H, W = hsi.shape
    HW = H * W
    k = int(0.5 * H * W)
    R = B * C
    dsize = jnp.dtype(hsi.dtype).itemsize

    # NCHW -> [B*C, H*W] is a free reshape of contiguous axes (no transpose):
    # HW (multiple of 128 for typical sizes) lands on the lane axis.
    x2 = hsi.reshape(R, HW)

    tm = _pick_row_tile(R, HW, dsize)
    grid_len = pl.cdiv(R, tm)
    r_pad = grid_len * tm
    if r_pad != R:
        # Benign positive pad rows (finite log); their stats are dropped below.
        pad = jnp.full((r_pad - R, HW), 0.5, dtype=hsi.dtype)
        x2 = jnp.concatenate([x2, pad], axis=0)

    kernel = functools.partial(_entropy_stats_kernel, k=k)

    stats = pl.pallas_call(
        kernel,
        out_shape=jax.ShapeDtypeStruct((r_pad, 128), jnp.float32),
        grid=(grid_len,),
        in_specs=[
            pl.BlockSpec(memory_space=pltpu.MemorySpace.SMEM),   # scalar conv weight
            pl.BlockSpec((tm, HW), lambda i: (i, 0)),            # row tile, lane-dense
        ],
        out_specs=pl.BlockSpec((tm, 128), lambda i: (i, 0)),     # tiny lane-dense stats
        compiler_params=pltpu.CompilerParams(
            dimension_semantics=("parallel",),        # independent row tiles -> both TCs on v7x
            vmem_limit_bytes=48 * 1024 * 1024,        # raise v5e/v6e 16/32 MiB scoped default
        ),
        cost_estimate=pl.CostEstimate(
            flops=r_pad * HW * (6 + 3 * _N_BISECT),
            transcendentals=r_pad * HW,
            bytes_accessed=r_pad * HW * dsize + r_pad * 128 * 4,
        ),
    )(jnp.asarray(w, jnp.float32).reshape(1), x2)

    row_sum = stats[:R, 0].reshape(B, C)
    top_sum = stats[:R, 1].reshape(B, C)
    mean = row_sum.sum(axis=0) / (B * HW)          # per-channel global entropy mean
    mean_high = top_sum.sum(axis=0) / (B * k)      # per-channel mean of the top half
    delta = 2.0 * (mean_high - mean)               # == mean_high - (mean - 0.5*mh)/0.5
    # TODO(synk): the final descending sort over C channel scalars (3 winners) has no
    # clean Pallas TPU equivalent; done with argsort on C scalars here.
    idx = jnp.argsort(-delta)[:3]
    return idx, delta


def reference_forward(hsi, w):
    """Pure-JAX transcription of the PyTorch forward (per-channel Python loop)."""
    B, C, H, W = hsi.shape
    deltas = []
    for i in range(C):
        grey = hsi[:, i, :, :][:, None, :, :]
        f1 = grey * w                                     # Conv2d(1,1,1,bias=False)
        entropy = -f1 * jnp.log(f1)
        mean = entropy.mean()
        ent2 = entropy.reshape(B, 1, H * W)
        kk = int(0.5 * H * W)
        vals_high = jax.lax.top_k(ent2.astype(jnp.float32), kk)[0]
        mean_high = vals_high.mean()
        low_mean = (mean - 0.5 * mean_high) / 0.5
        deltas.append(mean_high - low_mean)
    delta = jnp.stack(deltas)
    idx = jnp.argsort(-delta)[:3]
    return idx, delta


if __name__ == "__main__":
    B, C, H, W = 2, 4, 16, 16
    key = jax.random.PRNGKey(0)
    kx, kw = jax.random.split(key)

    # Positive pixels so log(f1) is finite (the module implicitly assumes this),
    # with distinct per-channel scales so the channel ranking is well separated.
    x = jax.random.uniform(kx, (B, C, H, W), jnp.float32, minval=0.05, maxval=0.95)
    x = x * jnp.array([1.0, 0.45, 0.75, 0.25], jnp.float32).reshape(1, C, 1, 1)
    w = jax.random.uniform(kw, (), jnp.float32, minval=0.5, maxval=1.0)

    idx, delta = fore_back_dis_forward(x, w)
    idx = jax.block_until_ready(idx)

    idx_ref, delta_ref = reference_forward(x, w)
    assert idx.shape == (3,)
    assert jnp.allclose(delta, delta_ref, atol=1e-5, rtol=1e-5), (delta, delta_ref)
    assert bool(jnp.all(idx == idx_ref)), (idx, idx_ref)

    print("KERNEL_OK")
</pallas_src>

<mosaic_0001>
module attributes {stable_mosaic.version = 11 : i64} {
  func.func @_entropy_stats_kernel(%arg0: i32, %arg1: memref<1xf32, #tpu.memory_space<smem>>, %arg2: memref<8x256xf32, #tpu.memory_space<vmem>>, %arg3: memref<8x128xf32, #tpu.memory_space<vmem>>) attributes {dimension_semantics = [#tpu.dimension_semantics<parallel>], iteration_bounds = array<i64: 1>, scalar_prefetch = 0 : i64, scratch_operands = 0 : i64, tpu.core_type = #tpu.core_type<tc>, window_params = [{transform_indices = @transform_0, window_bounds = array<i64: 1>}, {transform_indices = @transform_1, window_bounds = array<i64: 8, 256>}, {transform_indices = @transform_2, window_bounds = array<i64: 8, 128>}]} {
    %c0 = arith.constant 0 : index
    %0 = memref.load %arg1[%c0] : memref<1xf32, #tpu.memory_space<smem>>
    %c0_0 = arith.constant 0 : index
    %c0_1 = arith.constant 0 : index
    %1 = vector.load %arg2[%c0_0, %c0_1] : memref<8x256xf32, #tpu.memory_space<vmem>>, vector<8x256xf32>
    %2 = vector.broadcast %0 : f32 to vector<8x256xf32>
    %3 = arith.mulf %1, %2 : vector<8x256xf32>
    %cst = arith.constant 0.000000e+00 : f32
    %4 = vector.broadcast %cst : f32 to vector<8x256xf32>
    %5 = arith.subf %4, %3 : vector<8x256xf32>
    %6 = math.log %3 : vector<8x256xf32>
    %7 = arith.mulf %5, %6 : vector<8x256xf32>
    %cst_2 = arith.constant dense<0.000000e+00> : vector<8xf32>
    %8 = vector.multi_reduction <add>, %7, %cst_2 [1] : vector<8x256xf32> to vector<8xf32>
    %9 = vector.shape_cast %8 : vector<8xf32> to vector<8x1xf32>
    %cst_3 = arith.constant dense<0x7F800000> : vector<8xf32>
    %10 = vector.multi_reduction <minimumf>, %7, %cst_3 [1] : vector<8x256xf32> to vector<8xf32>
    %11 = vector.shape_cast %10 : vector<8xf32> to vector<8x1xf32>
    %cst_4 = arith.constant dense<0xFF800000> : vector<8xf32>
    %12 = vector.multi_reduction <maximumf>, %7, %cst_4 [1] : vector<8x256xf32> to vector<8xf32>
    %13 = vector.shape_cast %12 : vector<8xf32> to vector<8x1xf32>
    %cst_5 = arith.constant 1.280000e+02 : f32
    %c0_i32 = arith.constant 0 : i32
    %c26_i32 = arith.constant 26 : i32
    %14 = arith.addi %c0_i32, %c26_i32 : i32
    %c1_i32 = arith.constant 1 : i32
    %15:2 = scf.for %arg4 = %c0_i32 to %14 step %c1_i32 iter_args(%arg5 = %11, %arg6 = %13) -> (vector<8x1xf32>, vector<8x1xf32>)  : i32 {
      %40 = arith.addf %arg5, %arg6 : vector<8x1xf32>
      %cst_15 = arith.constant 5.000000e-01 : f32
      %41 = vector.broadcast %cst_15 : f32 to vector<8x1xf32>
      %42 = arith.mulf %41, %40 : vector<8x1xf32>
      %43 = vector.broadcast %42 : vector<8x1xf32> to vector<8x256xf32>
      %44 = arith.cmpf oge, %7, %43 : vector<8x256xf32>
      %cst_16 = arith.constant 1.000000e+00 : f32
      %cst_17 = arith.constant 0.000000e+00 : f32
      %45 = vector.broadcast %cst_16 : f32 to vector<8x256xf32>
      %46 = vector.broadcast %cst_17 : f32 to vector<8x256xf32>
      %47 = arith.select %44, %45, %46 : vector<8x256xi1>, vector<8x256xf32>
      %cst_18 = arith.constant dense<0.000000e+00> : vector<8xf32>
      %48 = vector.multi_reduction <add>, %47, %cst_18 [1] : vector<8x256xf32> to vector<8xf32>
      %49 = vector.shape_cast %48 : vector<8xf32> to vector<8x1xf32>
      %50 = vector.broadcast %cst_5 : f32 to vector<8x1xf32>
      %51 = arith.cmpf oge, %49, %50 : vector<8x1xf32>
      %52 = arith.select %51, %42, %arg5 : vector<8x1xi1>, vector<8x1xf32>
      %53 = arith.select %51, %arg6, %42 : vector<8x1xi1>, vector<8x1xf32>
      scf.yield %52, %53 : vector<8x1xf32>, vector<8x1xf32>
    }
    %16 = vector.broadcast %15#0 : vector<8x1xf32> to vector<8x256xf32>
    %17 = arith.cmpf ogt, %7, %16 : vector<8x256xf32>
    %cst_6 = arith.constant 1.000000e+00 : f32
    %cst_7 = arith.constant 0.000000e+00 : f32
    %18 = vector.broadcast %cst_6 : f32 to vector<8x256xf32>
    %19 = vector.broadcast %cst_7 : f32 to vector<8x256xf32>
    %20 = arith.select %17, %18, %19 : vector<8x256xi1>, vector<8x256xf32>
    %cst_8 = arith.constant dense<0.000000e+00> : vector<8xf32>
    %21 = vector.multi_reduction <add>, %20, %cst_8 [1] : vector<8x256xf32> to vector<8xf32>
    %22 = vector.shape_cast %21 : vector<8xf32> to vector<8x1xf32>
    %cst_9 = arith.constant 0.000000e+00 : f32
    %23 = vector.broadcast %cst_9 : f32 to vector<8x256xf32>
    %24 = arith.select %17, %7, %23 : vector<8x256xi1>, vector<8x256xf32>
    %cst_10 = arith.constant dense<0.000000e+00> : vector<8xf32>
    %25 = vector.multi_reduction <add>, %24, %cst_10 [1] : vector<8x256xf32> to vector<8xf32>
    %26 = vector.shape_cast %25 : vector<8xf32> to vector<8x1xf32>
    %cst_11 = arith.constant 1.280000e+02 : f32
    %27 = vector.broadcast %cst_11 : f32 to vector<8x1xf32>
    %28 = arith.subf %27, %22 : vector<8x1xf32>
    %29 = arith.mulf %28, %15#0 : vector<8x1xf32>
    %30 = arith.addf %26, %29 : vector<8x1xf32>
    %31 = tpu.iota {dimensions = array<i32: 1>} : vector<8x128xi32>
    %c0_i32_12 = arith.constant 0 : i32
    %32 = vector.broadcast %c0_i32_12 : i32 to vector<8x128xi32>
    %33 = arith.cmpi eq, %31, %32 : vector<8x128xi32>
    %34 = vector.shape_cast %9 : vector<8x1xf32> to vector<8x1xf32>
    %35 = vector.broadcast %34 : vector<8x1xf32> to vector<8x128xf32>
    %36 = vector.shape_cast %30 : vector<8x1xf32> to vector<8x1xf32>
    %37 = vector.broadcast %36 : vector<8x1xf32> to vector<8x128xf32>
    %38 = arith.select %33, %35, %37 : vector<8x128xi1>, vector<8x128xf32>
    %c0_13 = arith.constant 0 : index
    %c0_14 = arith.constant 0 : index
    %39 = vector.load %arg3[%c0_13, %c0_14] : memref<8x128xf32, #tpu.memory_space<vmem>>, vector<8x128xf32>
    tpu.vector_store %arg3[%c0_13, %c0_14], %38 {strides = array<i32>} : memref<8x128xf32, #tpu.memory_space<vmem>>, vector<8x128xf32>,
    return
  }
  func.func @transform_0(%arg0: i32) -> i32 {
    %c0_i32 = arith.constant 0 : i32
    %c0_i32_0 = arith.constant 0 : i32
    return %c0_i32 : i32
  }
  func.func @transform_1(%arg0: i32) -> (i32, i32) {
    %c0_i32 = arith.constant 0 : i32
    %c0_i32_0 = arith.constant 0 : i32
    return %arg0, %c0_i32 : i32, i32
  }
  func.func @transform_2(%arg0: i32) -> (i32, i32) {
    %c0_i32 = arith.constant 0 : i32
    %c0_i32_0 = arith.constant 0 : i32
    return %arg0, %c0_i32 : i32, i32
  }
}

</mosaic_0001>

<bundles_post_ra>
// kernel: tpu_custom_call.1
= control target key start
LH: loop header
LB: loop body
LE: loop exit
PB: predicated region body
PF: predicated region fallthrough
CT: control target
= control target key end

     0   :  { %8 = vsyncpa [#allocation4], 0  ;;  %s264_s0 = inlined_call_operand.<no memory space> [shape: f32[1], index: 0, kind: input, shape index: {}]   ;;  %s265_s1 = inlined_call_operand.hbm [shape: f32[8,256], index: 1, kind: input, shape index: {}]   ;;  %s266_s2 = inlined_call_operand.hbm [shape: f32[8,128], index: 2, kind: output, shape index: {}]  }
   0x1   :  { %9 = vsyncpa [#allocation5], 0  ;;  %s218_s9 = smov [#allocation3]   ;;  %s146_s13 = scalar_lea.hbm %s265_s1, 256 }
   0x2   :  { %s18_s10 = sshll.u32 %s218_s9, 4  ;;  %p147_p0 = scmp.ne.s32.totalorder %s265_s1, %s146_s13  ;;  %s19_s10 = int_to_ptr.vmem [resolvable:$true] %s18_s10 }
   0x3   :  { %p150_p1 = scmp.lt.u32.totalorder %s146_s13, %s265_s1 }
   0x5   :  { %p152_p2 = pnand %p150_p1, %p147_p0 }
   0x7   :  { %155 = shalt.err (!%p152_p2)
}
   0x8   :  { %s156_s18 = scalar_lea.vmem %s19_s10, 256  ;;  %p161_p4 = scmp.lt.s32.totalorder %s19_s10, %s19_s10 }
   0x9   :  { %p157_p3 = scmp.ne.s32.totalorder %s19_s10, %s156_s18  ;;  %p162_p5 = scmp.lt.s32.totalorder %s156_s18, %s156_s18 }
   0xb   :  { %p163_p6 = por %p162_p5, %p161_p4 }
   0xd   :  { %p164_p7 = pnand %p163_p6, %p157_p3 }
   0xf   :  { %167 = shalt.err (!%p164_p7)
}
  0x10   :  { %21 = dma.hbm_to_vmem [thread:$0]  %s265_s1, 256, %s19_s10, [#allocation4]  }
  0x11   :  { %202 = dma.done.wait [#allocation4], 256  }
  0x12   :  { %203 = vsyncadd [#allocation4], 4294967040  ;;  %v28_v0 = vstv %s264_s0  ;;  %v26_v1 = vld [vmem:[#allocation3] sm:$0xff]  ;;  %v27_v2 = vld [vmem:[#allocation3 + $0x8] sm:$0xff]  ;;  %s214_s0 = smov 0  }
  0x13   :  { %v29_v3 = vmul.f32 %v28_v0, %v26_v1  ;;  %v30_v4 = vmul.f32 %v28_v0, %v27_v2 }
  0x15   :  { %142 = vlog2.f32 %v29_v3  ;;  %v31_v5 = vsub.f32 0.0, %v29_v3  ;;  %v32_v7 = vsub.f32 0.0, %v30_v4 }
  0x16   :  { %144 = vlog2.f32 %v30_v4 }
  0x1f   :  { %v143_v6 = vpop.eup %142 }
  0x20   :  { %v145_v8 = vpop.eup %144  ;;  %v34_v9 = vmul.f32 0.6931472, %v143_v6 }
  0x21   :  { %v36_v10 = vmul.f32 0.6931472, %v145_v8 }
  0x22   :  { %v37_v11 = vmul.f32 %v34_v9, %v31_v5 }
  0x23   :  { %v38_v12 = vmul.f32 %v36_v10, %v32_v7 }
  0x25   :  { %v39_v13 = vadd.f32 %v38_v12, %v37_v11  ;;  %v45_v14 = vmax.f32 %v37_v11, %v38_v12  ;;  %v42_v15 = vmin.f32 %v37_v11, %v38_v12 }
  0x27   :  { %40 = vadd.xlane.f32.xlu0 %v39_v13  ;;  %46 = vmax.xlane.f32.xlu1 %v45_v14 }
  0x2b   :  { %43 = vmin.xlane.f32.xlu0 %v42_v15 }
  0xb4   :  { %v41_v16 = vpop.xlane.xlu0 %40  ;;  %v47_v17 = vpop.xlane.xlu1 %46  }
  0xb5   :  { %v206_v19 = vmov %v47_v17  }
  0xb8   :  { %v44_v18 = vpop.xlane.xlu0 %43  }
  0xb9   :  { %v210_v20 = vmov %v44_v18  }
  0xba LB: > { %v56_v21 = vadd.f32 %v208_v19, %v212_v20  ;;  %v219_v23 = vmov 0.0   ;;  %s53_s0 = sadd.s32 1, %s216_s0   ;;  %s216_s0 = sphi %s214_s0, %s53_s0   ;;  %v212_v20 = vphi %v210_v20, %v211_v20   ;;  %v208_v19 = vphi %v206_v19, %v67_v19  }
  0xbb   : > { %p50_p8 = scmp.ge.s32.totalorder %s53_s0, 26  }
  0xbc   : > { %v57_v22 = vmul.f32 0.5, %v56_v21  ;;  %v220_v29 = vmov (%p50_p8), 0.0   ;;  %v83_v36 = vlaneseq (%p50_p8)  ;;  %s221_s1 = smov (%p50_p8), [#allocation6]  }
  0xbd   :  { %s94_s23 = sshll.u32 (%p50_p8), %s221_s1, 4  ;;  %s95_s23 = int_to_ptr.vmem [resolvable:$true] %s94_s23 }
  0xbe   : > { %vm58_vm0 = vcmp.ge.f32.partialorder %v37_v11, %v57_v22  ;;  %vm59_vm1 = vcmp.ge.f32.partialorder %v38_v12, %v57_v22  ;;  %v84_v38 = vand.u32 (%p50_p8), 127, %v83_v36  ;;  %s168_s24 = scalar_lea.vmem (%p50_p8), %s95_s23, 128  ;;  %p173_p10 = scmp.lt.s32.totalorder (%p50_p8), %s95_s23, %s95_s23 }
  0xbf   : > { %v60_v24 = vsel %vm58_vm0, 1.0, %v219_v23  ;;  %v61_v25 = vsel %vm59_vm1, 1.0, %v219_v23  ;;  %p169_p9 = scmp.ne.s32.totalorder (%p50_p8), %s95_s23, %s168_s24  ;;  %p174_p11 = scmp.lt.s32.totalorder (%p50_p8), %s168_s24, %s168_s24 }
  0xc0   : > { %v62_v26 = vadd.f32 %v61_v25, %v60_v24  ;;  %vm85_vm5 = vcmp.eq.s32.totalorder (%p50_p8), %v84_v38, 0 }
  0xc1   :  { %p175_p12 = por (%p50_p8), %p174_p11, %p173_p10 }
  0xc2   : > { %63 = vadd.xlane.f32.xlu0 %v62_v26 }
  0xc3   :  { %p176_p13 = pnand (%p50_p8), %p175_p12, %p169_p9 }
 0x14c   :  { %52 = sbr.rel (!%p50_p8) target bundleno = 186 (0xba), region = 39 }
 0x14f   : > { %v64_v27 = vpop.xlane.xlu0 %63 }
 0x150   : > { %vm65_vm2 = vcmp.ge.f32.partialorder %v64_v27, 128.0 }
 0x151   : > { %v66_v28 = vsel %vm65_vm2, %v57_v22, %v212_v20   ;;  %v67_v19 = vsel %vm65_vm2, %v208_v19, %v57_v22  }
 0x152   : > { %v211_v20 = vmov %v66_v28   ;;  %vm68_vm3 = vcmp.gt.f32.partialorder (%p50_p8), %v37_v11, %v66_v28  ;;  %vm69_vm4 = vcmp.gt.f32.partialorder (%p50_p8), %v38_v12, %v66_v28 }
 0x153   :  { %v70_v30 = vsel %vm68_vm3, 1.0, %v220_v29  ;;  %v71_v31 = vsel %vm69_vm4, 1.0, %v220_v29  ;;  %v75_v32 = vsel %vm68_vm3, %v37_v11, 0.0  ;;  %v76_v33 = vsel %vm69_vm4, %v38_v12, 0.0 }
 0x154   :  { %v72_v34 = vadd.f32 %v71_v31, %v70_v30  ;;  %v77_v35 = vadd.f32 %v76_v33, %v75_v32 }
 0x156   :  { %73 = vadd.xlane.f32.xlu0 %v72_v34 }
 0x15a   :  { %78 = vadd.xlane.f32.xlu0 %v77_v35 }
 0x1e3   :  { %v74_v37 = vpop.xlane.xlu0 %73 }
 0x1e4   :  { %v80_v39 = vsub.f32 128.0, %v74_v37 }
 0x1e6   :  { %v81_v40 = vmul.f32 %v80_v39, %v66_v28 }
 0x1e7   :  { %v79_v41 = vpop.xlane.xlu0 %78 }
 0x1e8   :  { %v82_v42 = vadd.f32 %v81_v40, %v79_v41 }
 0x1ea   :  { %v86_v43 = vsel %vm85_vm5, %v41_v16, %v82_v42 }
 0x1eb   :  { %87 = vst [vmem:[#allocation6] sm:$0xff] %v86_v43 }
 0x1ec   :  { %179 = shalt.err (!%p176_p13)
}
 0x1ed   :  { %s180_s27 = scalar_lea.hbm %s266_s2, 128 }
 0x1ee   :  { %p181_p0 = scmp.ne.s32.totalorder %s266_s2, %s180_s27  ;;  %p184_p1 = scmp.lt.u32.totalorder %s180_s27, %s266_s2 }
 0x1f0   :  { %p186_p2 = pnand %p184_p1, %p181_p0 }
 0x1f2   :  { %189 = shalt.err (!%p186_p2)
}
 0x1f3   :  { %97 = dma.vmem_to_hbm [thread:$0]  %s95_s23, 128, %s266_s2, [#allocation5]  }
 0x1f4   :  { %204 = dma.done.wait [#allocation5], 128  }
 0x1f5   :  { %205 = vsyncadd [#allocation5], 4294967168 }
 0x1f6   :  { %101 = vsyncpa [#allocation4], 1 }
 0x1f7   :  { %102 = vsyncpa [#allocation5], 1 }

</bundles_post_ra>
